<compile_context>
chip_gen: v5e
topology: v5e:2x2
jax: 0.10.0
libtpu: 0.0.40
codegen_flags: <defaults>
</compile_context>

<pallas_src>
import jax
import jax.numpy as jnp
from jax import lax
from jax.experimental import pallas as pl
from jax.experimental.pallas import tpu as pltpu


def _round_up(x, m):
    return ((x + m - 1) // m) * m


# ---------------------------------------------------------------------------
# Pallas kernel: tiled (M, K) x (K, N) matmul with f32 accumulation
# ---------------------------------------------------------------------------
def _matmul_kernel(a_ref, b_ref, o_ref, acc_ref):
    @pl.when(pl.program_id(2) == 0)
    def _():
        acc_ref[...] = jnp.zeros_like(acc_ref)

    acc_ref[...] += jnp.dot(
        a_ref[...], b_ref[...], preferred_element_type=jnp.float32
    )

    @pl.when(pl.program_id(2) == pl.num_programs(2) - 1)
    def _():
        o_ref[...] = acc_ref[...].astype(o_ref.dtype)


def point_conv_matmul(gf, w, *, out_dtype=jnp.float32):
    """gf: (B, P, K), w: (K, Cout) -> (B, P, Cout).

    Collapses (B, P) into one M axis, casts to bf16, pads every axis to
    (8, 128)-aligned tiles (lane-dense output), and runs an M/N/K-tiled MXU
    matmul with an f32 VMEM accumulator over the K (reduction) grid axis.
    """
    B, P, K = gf.shape
    Kw, Cout = w.shape
    assert K == Kw

    M = B * P
    a = gf.reshape(M, K).astype(jnp.bfloat16)
    b = w.astype(jnp.bfloat16)

    # Tile sizes: multiples of (8, 128); small enough for v7x's 64 MiB VMEM
    # even with double-buffering (few MiB total), big enough to pipeline well.
    tm = min(512, _round_up(M, 8))
    tk = min(512, _round_up(K, 128))
    tn = min(256, _round_up(Cout, 128))

    Mp = _round_up(M, tm)
    Kp = _round_up(K, tk)
    Np = _round_up(Cout, tn)  # lane-dense output (multiple of 128)

    a = jnp.pad(a, ((0, Mp - M), (0, Kp - K)))
    b = jnp.pad(b, ((0, Kp - K), (0, Np - Cout)))

    grid = (Mp // tm, Np // tn, Kp // tk)

    cost = pl.CostEstimate(
        flops=int(2 * Mp * Kp * Np),
        transcendentals=0,
        bytes_accessed=int((Mp * Kp + Kp * Np) * 2 + Mp * Np * 4),
    )

    out = pl.pallas_call(
        _matmul_kernel,
        out_shape=jax.ShapeDtypeStruct((Mp, Np), out_dtype),
        grid_spec=pltpu.PrefetchScalarGridSpec(
            num_scalar_prefetch=0,
            grid=grid,
            in_specs=[
                pl.BlockSpec((tm, tk), lambda i, j, k: (i, k)),
                pl.BlockSpec((tk, tn), lambda i, j, k: (k, j)),
            ],
            out_specs=pl.BlockSpec((tm, tn), lambda i, j, k: (i, j)),
            scratch_shapes=[pltpu.VMEM((tm, tn), jnp.float32)],
        ),
        compiler_params=pltpu.CompilerParams(
            dimension_semantics=("parallel", "parallel", "arbitrary"),
        ),
        cost_estimate=cost,
    )(a, b)

    return out[:M, :Cout].reshape(B, P, Cout)


# ---------------------------------------------------------------------------
# JAX glue: FPS, ball query, grouping (data-dependent gathers)
# ---------------------------------------------------------------------------
def furthest_point_sample(xyz, npoint):
    """xyz: (B, N, 3) -> (B, npoint) int32. Matches pointnet2 FPS (start at 0)."""
    B, N, _ = xyz.shape

    def body(i, state):
        dist, farthest, inds = state
        inds = inds.at[:, i].set(farthest)
        centroid = jnp.take_along_axis(xyz, farthest[:, None, None], axis=1)
        d = jnp.sum((xyz - centroid) ** 2, axis=-1)
        dist = jnp.minimum(dist, d)
        farthest = jnp.argmax(dist, axis=-1).astype(jnp.int32)
        return dist, farthest, inds

    dist0 = jnp.full((B, N), 1e10, dtype=jnp.float32)
    far0 = jnp.zeros((B,), dtype=jnp.int32)
    inds0 = jnp.zeros((B, npoint), dtype=jnp.int32)
    _, _, inds = lax.fori_loop(0, npoint, body, (dist0, far0, inds0))
    return inds


def ball_query(radius, nsample, xyz, new_xyz):
    """xyz: (B,N,3), new_xyz: (B,S,3) -> idx (B,S,nsample) int32.

    First `nsample` in-radius neighbors in original order; slots beyond the
    in-radius count are padded with the first in-radius index (pointnet2
    semantics)."""
    d2 = jnp.sum((new_xyz[:, :, None, :] - xyz[:, None, :, :]) ** 2, axis=-1)
    valid = d2 < (radius ** 2)
    order = jnp.argsort(jnp.where(valid, 0, 1), axis=-1, stable=True)
    idx = order[:, :, :nsample].astype(jnp.int32)
    cnt = jnp.sum(valid, axis=-1, keepdims=True)
    slot = jnp.arange(nsample)[None, None, :]
    idx = jnp.where(slot < cnt, idx, idx[:, :, :1])
    return idx


def group_features(points, features, *, radius, nsample, stride):
    """Returns (new_xyz (B,S,3), gf (B,S,nsample*(3+C))).

    gf is flattened in natural (sample-major, channel-inner) order, i.e.
    k = sample_idx * (3 + C) + channel_idx — no transpose of the big tensor.
    """
    B, N, _ = points.shape
    C = features.shape[-1]
    npoint = (N + stride - 1) // stride

    inds = furthest_point_sample(points, npoint)                      # (B,S)
    new_xyz = jnp.take_along_axis(points, inds[..., None], axis=1)    # (B,S,3)
    idx = ball_query(radius, nsample, points, new_xyz)                # (B,S,ns)

    batch_idx = jnp.arange(B)[:, None, None]
    g_xyz = points[batch_idx, idx] - new_xyz[:, :, None, :]           # (B,S,ns,3)
    g_feat = features[batch_idx, idx]                                 # (B,S,ns,C)
    gf = jnp.concatenate([g_xyz, g_feat], axis=-1)                    # (B,S,ns,3+C)
    gf = gf.reshape(B, npoint, nsample * (3 + C))                     # sample-major
    return new_xyz, gf


def flatten_weight(weight):
    """(Cout, C+3, 1, ns) Conv2d weight -> (ns*(C+3), Cout).

    Row order matches group_features flattening (sample-major, channel-inner).
    Permuting the tiny weight avoids transposing the large activation.
    """
    Cout, Cin3, _, ns = weight.shape
    return jnp.transpose(weight[:, :, 0, :], (2, 1, 0)).reshape(ns * Cin3, Cout)


def point_conv_forward(points, features, weight, *, radius, gather_size, stride=1):
    """points: (B,N,3), features: (B,N,C), weight: (Cout, C+3, 1, gather_size).

    Returns (selected_xyz (B, npoint, 3), conv_features (B, npoint, Cout))."""
    new_xyz, gf = group_features(
        points, features, radius=radius, nsample=gather_size, stride=stride
    )
    w_flat = flatten_weight(weight)
    conv_features = point_conv_matmul(gf, w_flat)
    return new_xyz, conv_features


if __name__ == "__main__":
    # Small config consistent with the module: in_channels=4, out_channels=32,
    # radius=0.5, gather_size=8, stride=1  ->  npoint = N = 16.
    B, N, C_in, C_out = 2, 16, 4, 32
    radius, gather_size, stride = 0.5, 8, 1

    key = jax.random.PRNGKey(0)
    k_pts, k_feat, k_w = jax.random.split(key, 3)
    points = jax.random.uniform(k_pts, (B, N, 3), dtype=jnp.float32)
    features = jax.random.normal(k_feat, (B, N, C_in), dtype=jnp.float32)
    # Conv2d(in_channels + 3, out_channels, kernel_size=(1, gather_size), bias=False)
    weight = (jax.random.normal(k_w, (C_out, C_in + 3, 1, gather_size),
                                dtype=jnp.float32) * 0.05)

    selected_xyz, conv_features = point_conv_forward(
        points, features, weight,
        radius=radius, gather_size=gather_size, stride=stride)
    jax.block_until_ready((selected_xyz, conv_features))

    # Reference: identical grouping, same bf16 rounding of the inputs, f32 accum.
    new_xyz_ref, gf_ref = group_features(
        points, features, radius=radius, nsample=gather_size, stride=stride)
    w_ref = flatten_weight(weight)
    gf_bf = gf_ref.astype(jnp.bfloat16).astype(jnp.float32)
    w_bf = w_ref.astype(jnp.bfloat16).astype(jnp.float32)
    ref = jnp.einsum("bpk,ko->bpo", gf_bf, w_bf)

    assert conv_features.shape == (B, N, C_out)
    assert selected_xyz.shape == (B, N, 3)
    assert jnp.allclose(selected_xyz, new_xyz_ref)
    assert jnp.allclose(conv_features, ref, atol=1e-3, rtol=1e-3), (
        float(jnp.max(jnp.abs(conv_features - ref))))

    print("KERNEL_OK")
</pallas_src>

<mosaic_0001>
module attributes {stable_mosaic.version = 11 : i64} {
  func.func @_matmul_kernel(%arg0: i32, %arg1: i32, %arg2: i32, %arg3: memref<32x128xbf16, #tpu.memory_space<vmem>>, %arg4: memref<128x128xbf16, #tpu.memory_space<vmem>>, %arg5: memref<32x128xf32, #tpu.memory_space<vmem>>, %arg6: memref<32x128xf32, #tpu.memory_space<vmem>>) attributes {dimension_semantics = [#tpu.dimension_semantics<parallel>, #tpu.dimension_semantics<parallel>, #tpu.dimension_semantics<arbitrary>], iteration_bounds = array<i64: 1, 1, 1>, scalar_prefetch = 0 : i64, scratch_operands = 1 : i64, tpu.core_type = #tpu.core_type<tc>, window_params = [{transform_indices = @transform_0, window_bounds = array<i64: 32, 128>}, {transform_indices = @transform_1, window_bounds = array<i64: 128, 128>}, {transform_indices = @transform_2, window_bounds = array<i64: 32, 128>}]} {
    %c0_i32 = arith.constant 0 : i32
    %0 = arith.cmpi eq, %arg2, %c0_i32 : i32
    %1 = arith.extui %0 : i1 to i32
    %c0_i32_0 = arith.constant 0 : i32
    %2 = arith.cmpi ne, %1, %c0_i32_0 : i32
    scf.if %2 {
      %cst_10 = arith.constant 0.000000e+00 : f32
      %12 = vector.broadcast %cst_10 : f32 to vector<32x128xf32>
      %c0_11 = arith.constant 0 : index
      %c0_12 = arith.constant 0 : index
      %13 = vector.load %arg6[%c0_11, %c0_12] : memref<32x128xf32, #tpu.memory_space<vmem>>, vector<32x128xf32>
      tpu.vector_store %arg6[%c0_11, %c0_12], %12 {strides = array<i32>} : memref<32x128xf32, #tpu.memory_space<vmem>>, vector<32x128xf32>,
    } else {
    }
    %c0 = arith.constant 0 : index
    %c0_1 = arith.constant 0 : index
    %3 = vector.load %arg6[%c0, %c0_1] : memref<32x128xf32, #tpu.memory_space<vmem>>, vector<32x128xf32>
    %c0_2 = arith.constant 0 : index
    %c0_3 = arith.constant 0 : index
    %4 = vector.load %arg3[%c0_2, %c0_3] : memref<32x128xbf16, #tpu.memory_space<vmem>>, vector<32x128xbf16>
    %c0_4 = arith.constant 0 : index
    %c0_5 = arith.constant 0 : index
    %5 = vector.load %arg4[%c0_4, %c0_5] : memref<128x128xbf16, #tpu.memory_space<vmem>>, vector<128x128xbf16>
    %cst = arith.constant dense<0.000000e+00> : vector<32x128xf32>
    %6 = tpu.matmul %4, %5, %cst {dimension_numbers = #tpu.dot_dimension_numbers<[1], [0], [0], [1], [0, 0, 1, 1], [], []>} : vector<32x128xbf16>, vector<128x128xbf16>, vector<32x128xf32> -> vector<32x128xf32>
    %7 = arith.addf %3, %6 : vector<32x128xf32>
    %c0_6 = arith.constant 0 : index
    %c0_7 = arith.constant 0 : index
    %8 = vector.load %arg6[%c0_6, %c0_7] : memref<32x128xf32, #tpu.memory_space<vmem>>, vector<32x128xf32>
    tpu.vector_store %arg6[%c0_6, %c0_7], %7 {strides = array<i32>} : memref<32x128xf32, #tpu.memory_space<vmem>>, vector<32x128xf32>,
    %c0_i32_8 = arith.constant 0 : i32
    %9 = arith.cmpi eq, %arg2, %c0_i32_8 : i32
    %10 = arith.extui %9 : i1 to i32
    %c0_i32_9 = arith.constant 0 : i32
    %11 = arith.cmpi ne, %10, %c0_i32_9 : i32
    scf.if %11 {
      %c0_10 = arith.constant 0 : index
      %c0_11 = arith.constant 0 : index
      %12 = vector.load %arg6[%c0_10, %c0_11] : memref<32x128xf32, #tpu.memory_space<vmem>>, vector<32x128xf32>
      %c0_12 = arith.constant 0 : index
      %c0_13 = arith.constant 0 : index
      %13 = vector.load %arg5[%c0_12, %c0_13] : memref<32x128xf32, #tpu.memory_space<vmem>>, vector<32x128xf32>
      tpu.vector_store %arg5[%c0_12, %c0_13], %12 {strides = array<i32>} : memref<32x128xf32, #tpu.memory_space<vmem>>, vector<32x128xf32>,
    } else {
    }
    return
  }
  func.func @transform_0(%arg0: i32, %arg1: i32, %arg2: i32) -> (i32, i32) {
    %c0_i32 = arith.constant 0 : i32
    return %arg0, %arg2 : i32, i32
  }
  func.func @transform_1(%arg0: i32, %arg1: i32, %arg2: i32) -> (i32, i32) {
    %c0_i32 = arith.constant 0 : i32
    return %arg2, %arg1 : i32, i32
  }
  func.func @transform_2(%arg0: i32, %arg1: i32, %arg2: i32) -> (i32, i32) {
    %c0_i32 = arith.constant 0 : i32
    return %arg0, %arg1 : i32, i32
  }
}

</mosaic_0001>

<bundles_post_ra>
// kernel: tpu_custom_call.1
= control target key start
LH: loop header
LB: loop body
LE: loop exit
PB: predicated region body
PF: predicated region fallthrough
CT: control target
= control target key end

     0   :  { %7 = vsyncpa [#allocation4], 0  ;;  %s368_s0 = inlined_call_operand.hbm [shape: bf16[32,128], index: 0, kind: input, shape index: {}]   ;;  %s369_s1 = inlined_call_operand.hbm [shape: bf16[128,128], index: 1, kind: input, shape index: {}]   ;;  %s370_s2 = inlined_call_operand.hbm [shape: f32[32,128], index: 2, kind: output, shape index: {}]  }
   0x1   :  { %8 = vsyncpa [#allocation7], 0 }
   0x2   :  { %9 = vsyncpa [#allocation5], 0  ;;  %s14_s11 = sshll.u32 %s368_s0, 4  ;;  %s337_s12 = smov [#allocation3]   ;;  %s15_s11 = int_to_ptr.hbm [resolvable:$true] %s14_s11 }
   0x3   :  { %s16_s13 = sshll.u32 %s337_s12, 4  ;;  %s27_s16 = sshll.u32 %s369_s1, 4  ;;  %s17_s13 = int_to_ptr.vmem [resolvable:$true] %s16_s13  ;;  %s28_s16 = int_to_ptr.hbm [resolvable:$true] %s27_s16 }
   0x4   :  { %s338_s17 = smov 64   ;;  %s339_s18 = smov 4  }
   0x5   :  { %22 = dma.hbm_to_vmem [thread:$0]  %s15_s11, 256, %s17_s13, [#allocation4], %s338_s17, %s338_s17, %s339_s18  }
   0x6   :  { %s340_s19 = smov [#allocation6]  }
   0x7   :  { %s29_s20 = sshll.u32 %s340_s19, 4  ;;  %s30_s20 = int_to_ptr.vmem [resolvable:$true] %s29_s20 }
   0x8   :  { %35 = dma.hbm_to_vmem [thread:$0]  %s28_s16, 1024, %s30_s20, [#allocation7], %s338_s17, %s338_s17, %s339_s18  }
   0x9   :  { %331 = dma.done.wait [#allocation4], 256  }
   0xa   :  { %332 = vsyncadd [#allocation4], 4294967040 }
   0xb   :  { %333 = dma.done.wait [#allocation7], 1024  }
   0xc   :  { %334 = vsyncadd [#allocation7], 4294966272  ;;  %v243_v0 = vld [vmem:[#allocation6 + $0x38] sm:$0xff]  ;;  %v242_v1 = vld [vmem:[#allocation6 + $0x30] sm:$0xff]  ;;  %s341_s0 = smov [#allocation8]   ;;  %s180_s23 = sshll.u32 %s370_s2, 4  ;;  %s181_s23 = int_to_ptr.hbm [resolvable:$true] %s180_s23 }
   0xd   :  { %136 = vmatpush.bf16.msra.mxu0 %v243_v0  ;;  %244 = vmatpush.bf16.msra.mxu1 %v243_v0  ;;  %v241_v2 = vld [vmem:[#allocation6 + $0x28] sm:$0xff]  ;;  %v240_v3 = vld [vmem:[#allocation6 + $0x20] sm:$0xff]  ;;  %v239_v4 = vld [vmem:[#allocation6 + $0x18] sm:$0xff]  ;;  %s178_s1 = sshll.u32 %s341_s0, 4  ;;  %s342_s24 = smov 128   ;;  %s179_s1 = int_to_ptr.vmem [resolvable:$true] %s178_s1 }
   0xe   :  { %v238_v5 = vld [vmem:[#allocation6 + $0x10] sm:$0xff]  ;;  %v237_v6 = vld [vmem:[#allocation6 + $0x8] sm:$0xff]  ;;  %v236_v7 = vld [vmem:[#allocation6] sm:$0xff]  ;;  %s343_s25 = smov 8  }
   0xf   :  { %v234_v8 = vld [vmem:[#allocation3] sm:$0xff]  ;;  %v235_v9 = vld [vmem:[#allocation3 + $0x8] sm:$0xff] }
  0x11   :  { %137 = vmatpush.bf16.msra.mxu0 %v242_v1  ;;  %245 = vmatpush.bf16.msra.mxu1 %v242_v1 }
  0x15   :  { %138 = vmatpush.bf16.msra.mxu0 %v241_v2  ;;  %246 = vmatpush.bf16.msra.mxu1 %v241_v2 }
  0x19   :  { %139 = vmatpush.bf16.msra.mxu0 %v240_v3  ;;  %247 = vmatpush.bf16.msra.mxu1 %v240_v3 }
  0x1d   :  { %140 = vmatpush.bf16.msra.mxu0 %v239_v4  ;;  %248 = vmatpush.bf16.msra.mxu1 %v239_v4 }
  0x21   :  { %141 = vmatpush.bf16.msra.mxu0 %v238_v5  ;;  %249 = vmatpush.bf16.msra.mxu1 %v238_v5 }
  0x25   :  { %142 = vmatpush.bf16.msra.mxu0 %v237_v6  ;;  %250 = vmatpush.bf16.msra.mxu1 %v237_v6 }
  0x29   :  { %143 = vmatpush.bf16.msra.mxu0 %v236_v7  ;;  %251 = vmatpush.bf16.msra.mxu1 %v236_v7 }
  0x2c   :  { %144 = vmatmul.bf16.vlgmr.msra.gmra.mxu0 %v234_v8  ;;  %149 = vmatmul.bf16.vlgmr.msra.gmra.mxu1 %v235_v9 }
  0xa9   :  { %v145_v10 = vpop.f32.mrf.mxu0  ;;  %v150_v11 = vpop.f32.mrf.mxu1 }
  0xaa   :  { %170 = vst [vmem:[#allocation8] sm:$0xff] %v145_v10 }
  0xab   :  { %172 = vst [vmem:[#allocation8 + $0x10] sm:$0xff] %v150_v11 }
  0xb1   :  { %v147_v12 = vpop.f32.mrf.mxu0  ;;  %v152_v13 = vpop.f32.mrf.mxu1 }
  0xb2   :  { %171 = vst [vmem:[#allocation8 + $0x8] sm:$0xff] %v147_v12 }
  0xb3   :  { %173 = vst [vmem:[#allocation8 + $0x18] sm:$0xff] %v152_v13 }
  0xb4   :  { %186 = dma.vmem_to_hbm [thread:$0]  %s179_s1, 512, %s181_s23, [#allocation5], %s342_s24, %s342_s24, %s343_s25  }
  0xb5   :  { %335 = dma.done.wait [#allocation5], 512  }
  0xb6   :  { %336 = vsyncadd [#allocation5], 4294966784 }
  0xb7   :  { %191 = vsyncpa [#allocation4], 1 }
  0xb8   :  { %192 = vsyncpa [#allocation7], 1 }
  0xb9   :  { %193 = vsyncpa [#allocation5], 1 }

</bundles_post_ra>
